<compile_context>
chip_gen: v5e
topology: v5e:2x2
jax: 0.10.0
libtpu: 0.0.40
codegen_flags: <defaults>
</compile_context>

<pallas_src>
import functools

import jax
import jax.numpy as jnp
from jax.experimental import pallas as pl
from jax.experimental.pallas import tpu as pltpu


def _round_up(x, m):
    return ((x + m - 1) // m) * m


def _make_kernel(n_glu):
    """Build the fused MLP kernel for `n_glu` GLU layers + 1 final linear."""

    def kernel(*refs):
        x_ref = refs[0]
        o_ref = refs[-1]
        p_refs = refs[1:-1]

        h = x_ref[...]                      # bf16 activations
        idx = 0
        for _ in range(n_glu):
            wv_ref, wg_ref, bv_ref, bg_ref = p_refs[idx:idx + 4]
            idx += 4
            # Two dots instead of one 2h-wide dot + lane slicing.
            val = jnp.dot(h, wv_ref[...],
                          preferred_element_type=jnp.float32) + bv_ref[...]
            gate = jnp.dot(h, wg_ref[...],
                           preferred_element_type=jnp.float32) + bg_ref[...]
            h = (val * jax.nn.sigmoid(gate)).astype(jnp.bfloat16)

        w_ref, b_ref = p_refs[idx], p_refs[idx + 1]
        out = jnp.dot(h, w_ref[...],
                      preferred_element_type=jnp.float32) + b_ref[...]
        o_ref[...] = out.astype(o_ref.dtype)

    return kernel


def nnet_forward(x, params, tm=1024):
    """Fused forward pass.

    params: list of (w_t, b) with w_t shaped [in, out] (already weight-normed,
    already transposed), b shaped [1, out].  The last entry is the final
    linear layer; all earlier layers are followed by GLU.
    """
    batch, n_in = x.shape
    n_out = params[-1][0].shape[1]
    n_glu = len(params) - 1

    # Batch tile: large for pipelining, but never bigger than the (sublane-
    # rounded) batch.  Pad the batch so it divides evenly; padded rows are
    # computed (finite garbage) and sliced off afterwards.
    tm = min(tm, _round_up(batch, 8))
    padded = _round_up(batch, tm)
    if padded != batch:
        x = jnp.pad(x, ((0, padded - batch), (0, 0)))
    x_bf16 = x.astype(jnp.bfloat16)

    flat_inputs = [x_bf16]
    in_specs = [pl.BlockSpec((tm, n_in), lambda i: (i, 0))]

    def add_resident(arr):
        flat_inputs.append(arr)
        # Full-array block, constant index -> stays VMEM-resident across grid.
        in_specs.append(pl.BlockSpec(arr.shape, lambda i: (0, 0)))

    # Cost-estimate bookkeeping.
    flops = 0
    transcendentals = 0
    bytes_accessed = x_bf16.size * 2 + padded * n_out * 4

    d_in = n_in
    for li, (w_t, b) in enumerate(params):
        d_out = w_t.shape[1]
        flops += 2 * padded * d_in * d_out
        bytes_accessed += w_t.size * 2 + b.size * 4
        if li < n_glu:
            half = d_out // 2
            # Pre-split GLU weights so the kernel never lane-slices.
            add_resident(w_t[:, :half].astype(jnp.bfloat16))   # value weights
            add_resident(w_t[:, half:].astype(jnp.bfloat16))   # gate weights
            add_resident(b[:, :half].astype(jnp.float32))
            add_resident(b[:, half:].astype(jnp.float32))
            transcendentals += padded * half
            d_in = half
        else:
            add_resident(w_t.astype(jnp.bfloat16))
            add_resident(b.astype(jnp.float32))
            d_in = d_out

    grid = (padded // tm,)

    out = pl.pallas_call(
        _make_kernel(n_glu),
        out_shape=jax.ShapeDtypeStruct((padded, n_out), jnp.float32),
        grid_spec=pltpu.PrefetchScalarGridSpec(
            num_scalar_prefetch=0,
            grid=grid,
            in_specs=in_specs,
            out_specs=pl.BlockSpec((tm, n_out), lambda i: (i, 0)),
        ),
        compiler_params=pltpu.CompilerParams(
            dimension_semantics=("parallel",),
            vmem_limit_bytes=32 * 1024 * 1024,
        ),
        cost_estimate=pl.CostEstimate(
            flops=int(flops),
            transcendentals=int(transcendentals),
            bytes_accessed=int(bytes_accessed),
        ),
    )(*flat_inputs)

    return out[:batch]


def make_params(key, n_in, n_out, hide=(64, 64, 8)):
    """Deterministic parameter init mirroring the torch module's structure.

    For layer i the torch module holds weight_norm params (v, g, bias); the
    effective weight is W = g * v / ||v||_2 (row-wise norm over the input dim).
    """
    dims = []
    n_hide = len(hide)
    for i in range(n_hide + 1):
        if i == 0:
            dims.append((n_in, hide[0] * 2))
        elif i == n_hide:
            dims.append((hide[i - 1], n_out))
        else:
            dims.append((hide[i - 1], hide[i] * 2))

    params = []
    for (d_in, d_out) in dims:
        key, kv, kg, kb = jax.random.split(key, 4)
        v = 0.01 * jax.random.normal(kv, (d_out, d_in), dtype=jnp.float32)
        g = jnp.abs(jax.random.normal(kg, (d_out, 1), dtype=jnp.float32)) + 0.5
        bias = 0.01 * jax.random.normal(kb, (d_out,), dtype=jnp.float32)
        # weight-norm reparameterization (glue, done once outside the kernel)
        w_eff = g * v / jnp.linalg.norm(v, axis=1, keepdims=True)
        params.append((w_eff.T, bias.reshape(1, d_out)))  # transposed: [in, out]
    return params


def reference_forward(x, params, compute_dtype=jnp.float32):
    """Pure-JAX reference of the torch forward.

    With compute_dtype=jnp.bfloat16 it mirrors the kernel's mixed-precision
    scheme (bf16 operands, f32 accumulation / GLU) for tight comparison.
    """
    n_layers = len(params)
    h = x.astype(compute_dtype)
    for i, (w_t, b) in enumerate(params):
        y = jnp.dot(h.astype(jnp.float32),
                    w_t.astype(compute_dtype).astype(jnp.float32),
                    preferred_element_type=jnp.float32) + b
        if i < n_layers - 1:
            half = y.shape[-1] // 2
            y = y[:, :half] * jax.nn.sigmoid(y[:, half:])
            h = y.astype(compute_dtype)
        else:
            h = y
    return h


if __name__ == "__main__":
    n_in, n_out, batch = 32, 16, 8
    key = jax.random.PRNGKey(0)
    key, kx = jax.random.split(key)
    x = jax.random.normal(kx, (batch, n_in), dtype=jnp.float32)

    params = make_params(key, n_in, n_out)

    out = nnet_forward(x, params)
    out = jax.block_until_ready(out)

    # Tight check against a reference that mirrors the kernel's bf16/f32 scheme.
    ref_bf16 = reference_forward(x, params, compute_dtype=jnp.bfloat16)
    assert out.shape == (batch, n_out)
    assert jnp.allclose(out, ref_bf16, atol=5e-3, rtol=5e-3), (
        float(jnp.max(jnp.abs(out - ref_bf16))))

    # Loose sanity check against the full-f32 torch-equivalent forward.
    ref_f32 = reference_forward(x, params, compute_dtype=jnp.float32)
    assert jnp.allclose(out, ref_f32, atol=5e-2, rtol=2e-1), (
        float(jnp.max(jnp.abs(out - ref_f32))))

    print("KERNEL_OK")
</pallas_src>

<mosaic_0001>
module attributes {stable_mosaic.version = 11 : i64} {
  func.func @kernel(%arg0: i32, %arg1: memref<8x32xbf16, #tpu.memory_space<vmem>>, %arg2: memref<32x64xbf16, #tpu.memory_space<vmem>>, %arg3: memref<32x64xbf16, #tpu.memory_space<vmem>>, %arg4: memref<1x64xf32, #tpu.memory_space<vmem>>, %arg5: memref<1x64xf32, #tpu.memory_space<vmem>>, %arg6: memref<64x64xbf16, #tpu.memory_space<vmem>>, %arg7: memref<64x64xbf16, #tpu.memory_space<vmem>>, %arg8: memref<1x64xf32, #tpu.memory_space<vmem>>, %arg9: memref<1x64xf32, #tpu.memory_space<vmem>>, %arg10: memref<64x8xbf16, #tpu.memory_space<vmem>>, %arg11: memref<64x8xbf16, #tpu.memory_space<vmem>>, %arg12: memref<1x8xf32, #tpu.memory_space<vmem>>, %arg13: memref<1x8xf32, #tpu.memory_space<vmem>>, %arg14: memref<8x16xbf16, #tpu.memory_space<vmem>>, %arg15: memref<1x16xf32, #tpu.memory_space<vmem>>, %arg16: memref<8x16xf32, #tpu.memory_space<vmem>>) attributes {dimension_semantics = [#tpu.dimension_semantics<parallel>], iteration_bounds = array<i64: 1>, scalar_prefetch = 0 : i64, scratch_operands = 0 : i64, tpu.core_type = #tpu.core_type<tc>, window_params = [{transform_indices = @transform_0, window_bounds = array<i64: 8, 32>}, {pipeline_mode = #tpu.pipeline_mode<synchronous>, transform_indices = @transform_1, window_bounds = array<i64: 32, 64>}, {pipeline_mode = #tpu.pipeline_mode<synchronous>, transform_indices = @transform_2, window_bounds = array<i64: 32, 64>}, {pipeline_mode = #tpu.pipeline_mode<synchronous>, transform_indices = @transform_3, window_bounds = array<i64: 1, 64>}, {pipeline_mode = #tpu.pipeline_mode<synchronous>, transform_indices = @transform_4, window_bounds = array<i64: 1, 64>}, {pipeline_mode = #tpu.pipeline_mode<synchronous>, transform_indices = @transform_5, window_bounds = array<i64: 64, 64>}, {pipeline_mode = #tpu.pipeline_mode<synchronous>, transform_indices = @transform_6, window_bounds = array<i64: 64, 64>}, {pipeline_mode = #tpu.pipeline_mode<synchronous>, transform_indices = @transform_7, window_bounds = array<i64: 1, 64>}, {pipeline_mode = #tpu.pipeline_mode<synchronous>, transform_indices = @transform_8, window_bounds = array<i64: 1, 64>}, {pipeline_mode = #tpu.pipeline_mode<synchronous>, transform_indices = @transform_9, window_bounds = array<i64: 64, 8>}, {pipeline_mode = #tpu.pipeline_mode<synchronous>, transform_indices = @transform_10, window_bounds = array<i64: 64, 8>}, {pipeline_mode = #tpu.pipeline_mode<synchronous>, transform_indices = @transform_11, window_bounds = array<i64: 1, 8>}, {pipeline_mode = #tpu.pipeline_mode<synchronous>, transform_indices = @transform_12, window_bounds = array<i64: 1, 8>}, {pipeline_mode = #tpu.pipeline_mode<synchronous>, transform_indices = @transform_13, window_bounds = array<i64: 8, 16>}, {pipeline_mode = #tpu.pipeline_mode<synchronous>, transform_indices = @transform_14, window_bounds = array<i64: 1, 16>}, {transform_indices = @transform_15, window_bounds = array<i64: 8, 16>}]} {
    %c0 = arith.constant 0 : index
    %c0_0 = arith.constant 0 : index
    %0 = vector.load %arg1[%c0, %c0_0] : memref<8x32xbf16, #tpu.memory_space<vmem>>, vector<8x32xbf16>
    %c0_1 = arith.constant 0 : index
    %c0_2 = arith.constant 0 : index
    %1 = vector.load %arg2[%c0_1, %c0_2] : memref<32x64xbf16, #tpu.memory_space<vmem>>, vector<32x64xbf16>
    %cst = arith.constant dense<0.000000e+00> : vector<8x64xf32>
    %2 = tpu.matmul %0, %1, %cst {dimension_numbers = #tpu.dot_dimension_numbers<[1], [0], [0], [1], [0, 0, 1, 1], [], []>} : vector<8x32xbf16>, vector<32x64xbf16>, vector<8x64xf32> -> vector<8x64xf32>
    %c0_3 = arith.constant 0 : index
    %c0_4 = arith.constant 0 : index
    %3 = vector.load %arg4[%c0_3, %c0_4] : memref<1x64xf32, #tpu.memory_space<vmem>>, vector<1x64xf32>
    %4 = vector.broadcast %3 : vector<1x64xf32> to vector<8x64xf32>
    %5 = arith.addf %2, %4 : vector<8x64xf32>
    %c0_5 = arith.constant 0 : index
    %c0_6 = arith.constant 0 : index
    %6 = vector.load %arg3[%c0_5, %c0_6] : memref<32x64xbf16, #tpu.memory_space<vmem>>, vector<32x64xbf16>
    %cst_7 = arith.constant dense<0.000000e+00> : vector<8x64xf32>
    %7 = tpu.matmul %0, %6, %cst_7 {dimension_numbers = #tpu.dot_dimension_numbers<[1], [0], [0], [1], [0, 0, 1, 1], [], []>} : vector<8x32xbf16>, vector<32x64xbf16>, vector<8x64xf32> -> vector<8x64xf32>
    %c0_8 = arith.constant 0 : index
    %c0_9 = arith.constant 0 : index
    %8 = vector.load %arg5[%c0_8, %c0_9] : memref<1x64xf32, #tpu.memory_space<vmem>>, vector<1x64xf32>
    %9 = vector.broadcast %8 : vector<1x64xf32> to vector<8x64xf32>
    %10 = arith.addf %7, %9 : vector<8x64xf32>
    %11 = arith.negf %10 : vector<8x64xf32>
    %12 = math.exp %11 : vector<8x64xf32>
    %cst_10 = arith.constant 1.000000e+00 : f32
    %13 = vector.broadcast %cst_10 : f32 to vector<8x64xf32>
    %14 = arith.addf %13, %12 : vector<8x64xf32>
    %15 = arith.divf %13, %14 : vector<8x64xf32>
    %16 = arith.mulf %5, %15 : vector<8x64xf32>
    %17 = arith.truncf %16 : vector<8x64xf32> to vector<8x64xbf16>
    %c0_11 = arith.constant 0 : index
    %c0_12 = arith.constant 0 : index
    %18 = vector.load %arg6[%c0_11, %c0_12] : memref<64x64xbf16, #tpu.memory_space<vmem>>, vector<64x64xbf16>
    %cst_13 = arith.constant dense<0.000000e+00> : vector<8x64xf32>
    %19 = tpu.matmul %17, %18, %cst_13 {dimension_numbers = #tpu.dot_dimension_numbers<[1], [0], [0], [1], [0, 0, 1, 1], [], []>} : vector<8x64xbf16>, vector<64x64xbf16>, vector<8x64xf32> -> vector<8x64xf32>
    %c0_14 = arith.constant 0 : index
    %c0_15 = arith.constant 0 : index
    %20 = vector.load %arg8[%c0_14, %c0_15] : memref<1x64xf32, #tpu.memory_space<vmem>>, vector<1x64xf32>
    %21 = vector.broadcast %20 : vector<1x64xf32> to vector<8x64xf32>
    %22 = arith.addf %19, %21 : vector<8x64xf32>
    %c0_16 = arith.constant 0 : index
    %c0_17 = arith.constant 0 : index
    %23 = vector.load %arg7[%c0_16, %c0_17] : memref<64x64xbf16, #tpu.memory_space<vmem>>, vector<64x64xbf16>
    %cst_18 = arith.constant dense<0.000000e+00> : vector<8x64xf32>
    %24 = tpu.matmul %17, %23, %cst_18 {dimension_numbers = #tpu.dot_dimension_numbers<[1], [0], [0], [1], [0, 0, 1, 1], [], []>} : vector<8x64xbf16>, vector<64x64xbf16>, vector<8x64xf32> -> vector<8x64xf32>
    %c0_19 = arith.constant 0 : index
    %c0_20 = arith.constant 0 : index
    %25 = vector.load %arg9[%c0_19, %c0_20] : memref<1x64xf32, #tpu.memory_space<vmem>>, vector<1x64xf32>
    %26 = vector.broadcast %25 : vector<1x64xf32> to vector<8x64xf32>
    %27 = arith.addf %24, %26 : vector<8x64xf32>
    %28 = arith.negf %27 : vector<8x64xf32>
    %29 = math.exp %28 : vector<8x64xf32>
    %cst_21 = arith.constant 1.000000e+00 : f32
    %30 = vector.broadcast %cst_21 : f32 to vector<8x64xf32>
    %31 = arith.addf %30, %29 : vector<8x64xf32>
    %32 = arith.divf %30, %31 : vector<8x64xf32>
    %33 = arith.mulf %22, %32 : vector<8x64xf32>
    %34 = arith.truncf %33 : vector<8x64xf32> to vector<8x64xbf16>
    %c0_22 = arith.constant 0 : index
    %c0_23 = arith.constant 0 : index
    %35 = vector.load %arg10[%c0_22, %c0_23] : memref<64x8xbf16, #tpu.memory_space<vmem>>, vector<64x8xbf16>
    %cst_24 = arith.constant dense<0.000000e+00> : vector<8x8xf32>
    %36 = tpu.matmul %34, %35, %cst_24 {dimension_numbers = #tpu.dot_dimension_numbers<[1], [0], [0], [1], [0, 0, 1, 1], [], []>} : vector<8x64xbf16>, vector<64x8xbf16>, vector<8x8xf32> -> vector<8x8xf32>
    %c0_25 = arith.constant 0 : index
    %c0_26 = arith.constant 0 : index
    %37 = vector.load %arg12[%c0_25, %c0_26] : memref<1x8xf32, #tpu.memory_space<vmem>>, vector<1x8xf32>
    %38 = vector.broadcast %37 : vector<1x8xf32> to vector<8x8xf32>
    %39 = arith.addf %36, %38 : vector<8x8xf32>
    %c0_27 = arith.constant 0 : index
    %c0_28 = arith.constant 0 : index
    %40 = vector.load %arg11[%c0_27, %c0_28] : memref<64x8xbf16, #tpu.memory_space<vmem>>, vector<64x8xbf16>
    %cst_29 = arith.constant dense<0.000000e+00> : vector<8x8xf32>
    %41 = tpu.matmul %34, %40, %cst_29 {dimension_numbers = #tpu.dot_dimension_numbers<[1], [0], [0], [1], [0, 0, 1, 1], [], []>} : vector<8x64xbf16>, vector<64x8xbf16>, vector<8x8xf32> -> vector<8x8xf32>
    %c0_30 = arith.constant 0 : index
    %c0_31 = arith.constant 0 : index
    %42 = vector.load %arg13[%c0_30, %c0_31] : memref<1x8xf32, #tpu.memory_space<vmem>>, vector<1x8xf32>
    %43 = vector.broadcast %42 : vector<1x8xf32> to vector<8x8xf32>
    %44 = arith.addf %41, %43 : vector<8x8xf32>
    %45 = arith.negf %44 : vector<8x8xf32>
    %46 = math.exp %45 : vector<8x8xf32>
    %cst_32 = arith.constant 1.000000e+00 : f32
    %47 = vector.broadcast %cst_32 : f32 to vector<8x8xf32>
    %48 = arith.addf %47, %46 : vector<8x8xf32>
    %49 = arith.divf %47, %48 : vector<8x8xf32>
    %50 = arith.mulf %39, %49 : vector<8x8xf32>
    %51 = arith.truncf %50 : vector<8x8xf32> to vector<8x8xbf16>
    %c0_33 = arith.constant 0 : index
    %c0_34 = arith.constant 0 : index
    %52 = vector.load %arg14[%c0_33, %c0_34] : memref<8x16xbf16, #tpu.memory_space<vmem>>, vector<8x16xbf16>
    %cst_35 = arith.constant dense<0.000000e+00> : vector<8x16xf32>
    %53 = tpu.matmul %51, %52, %cst_35 {dimension_numbers = #tpu.dot_dimension_numbers<[1], [0], [0], [1], [0, 0, 1, 1], [], []>} : vector<8x8xbf16>, vector<8x16xbf16>, vector<8x16xf32> -> vector<8x16xf32>
    %c0_36 = arith.constant 0 : index
    %c0_37 = arith.constant 0 : index
    %54 = vector.load %arg15[%c0_36, %c0_37] : memref<1x16xf32, #tpu.memory_space<vmem>>, vector<1x16xf32>
    %55 = vector.broadcast %54 : vector<1x16xf32> to vector<8x16xf32>
    %56 = arith.addf %53, %55 : vector<8x16xf32>
    %c0_38 = arith.constant 0 : index
    %c0_39 = arith.constant 0 : index
    %57 = vector.load %arg16[%c0_38, %c0_39] : memref<8x16xf32, #tpu.memory_space<vmem>>, vector<8x16xf32>
    tpu.vector_store %arg16[%c0_38, %c0_39], %56 {strides = array<i32>} : memref<8x16xf32, #tpu.memory_space<vmem>>, vector<8x16xf32>,
    return
  }
  func.func @transform_0(%arg0: i32) -> (i32, i32) {
    %c0_i32 = arith.constant 0 : i32
    %c0_i32_0 = arith.constant 0 : i32
    return %arg0, %c0_i32 : i32, i32
  }
  func.func @transform_1(%arg0: i32) -> (i32, i32) {
    %c0_i32 = arith.constant 0 : i32
    %c0_i32_0 = arith.constant 0 : i32
    %c0_i32_1 = arith.constant 0 : i32
    return %c0_i32, %c0_i32_0 : i32, i32
  }
  func.func @transform_2(%arg0: i32) -> (i32, i32) {
    %c0_i32 = arith.constant 0 : i32
    %c0_i32_0 = arith.constant 0 : i32
    %c0_i32_1 = arith.constant 0 : i32
    return %c0_i32, %c0_i32_0 : i32, i32
  }
  func.func @transform_3(%arg0: i32) -> (i32, i32) {
    %c0_i32 = arith.constant 0 : i32
    %c0_i32_0 = arith.constant 0 : i32
    %c0_i32_1 = arith.constant 0 : i32
    return %c0_i32, %c0_i32_0 : i32, i32
  }
  func.func @transform_4(%arg0: i32) -> (i32, i32) {
    %c0_i32 = arith.constant 0 : i32
    %c0_i32_0 = arith.constant 0 : i32
    %c0_i32_1 = arith.constant 0 : i32
    return %c0_i32, %c0_i32_0 : i32, i32
  }
  func.func @transform_5(%arg0: i32) -> (i32, i32) {
    %c0_i32 = arith.constant 0 : i32
    %c0_i32_0 = arith.constant 0 : i32
    %c0_i32_1 = arith.constant 0 : i32
    return %c0_i32, %c0_i32_0 : i32, i32
  }
  func.func @transform_6(%arg0: i32) -> (i32, i32) {
    %c0_i32 = arith.constant 0 : i32
    %c0_i32_0 = arith.constant 0 : i32
    %c0_i32_1 = arith.constant 0 : i32
    return %c0_i32, %c0_i32_0 : i32, i32
  }
  func.func @transform_7(%arg0: i32) -> (i32, i32) {
    %c0_i32 = arith.constant 0 : i32
    %c0_i32_0 = arith.constant 0 : i32
    %c0_i32_1 = arith.constant 0 : i32
    return %c0_i32, %c0_i32_0 : i32, i32
  }
  func.func @transform_8(%arg0: i32) -> (i32, i32) {
    %c0_i32 = arith.constant 0 : i32
    %c0_i32_0 = arith.constant 0 : i32
    %c0_i32_1 = arith.constant 0 : i32
    return %c0_i32, %c0_i32_0 : i32, i32
  }
  func.func @transform_9(%arg0: i32) -> (i32, i32) {
    %c0_i32 = arith.constant 0 : i32
    %c0_i32_0 = arith.constant 0 : i32
    %c0_i32_1 = arith.constant 0 : i32
    return %c0_i32, %c0_i32_0 : i32, i32
  }
  func.func @transform_10(%arg0: i32) -> (i32, i32) {
    %c0_i32 = arith.constant 0 : i32
    %c0_i32_0 = arith.constant 0 : i32
    %c0_i32_1 = arith.constant 0 : i32
    return %c0_i32, %c0_i32_0 : i32, i32
  }
  func.func @transform_11(%arg0: i32) -> (i32, i32) {
    %c0_i32 = arith.constant 0 : i32
    %c0_i32_0 = arith.constant 0 : i32
    %c0_i32_1 = arith.constant 0 : i32
    return %c0_i32, %c0_i32_0 : i32, i32
  }
  func.func @transform_12(%arg0: i32) -> (i32, i32) {
    %c0_i32 = arith.constant 0 : i32
    %c0_i32_0 = arith.constant 0 : i32
    %c0_i32_1 = arith.constant 0 : i32
    return %c0_i32, %c0_i32_0 : i32, i32
  }
  func.func @transform_13(%arg0: i32) -> (i32, i32) {
    %c0_i32 = arith.constant 0 : i32
    %c0_i32_0 = arith.constant 0 : i32
    %c0_i32_1 = arith.constant 0 : i32
    return %c0_i32, %c0_i32_0 : i32, i32
  }
  func.func @transform_14(%arg0: i32) -> (i32, i32) {
    %c0_i32 = arith.constant 0 : i32
    %c0_i32_0 = arith.constant 0 : i32
    %c0_i32_1 = arith.constant 0 : i32
    return %c0_i32, %c0_i32_0 : i32, i32
  }
  func.func @transform_15(%arg0: i32) -> (i32, i32) {
    %c0_i32 = arith.constant 0 : i32
    %c0_i32_0 = arith.constant 0 : i32
    return %arg0, %c0_i32 : i32, i32
  }
}

</mosaic_0001>

<bundles_post_ra>
// kernel: tpu_custom_call.1
= control target key start
LH: loop header
LB: loop body
LE: loop exit
PB: predicated region body
PF: predicated region fallthrough
CT: control target
= control target key end

     0   :  { %20 = vsyncpa [#allocation3], 0  ;;  %s1016_s0 = inlined_call_operand.vmem [shape: bf16[8,32], index: 0, kind: input, shape index: {}]   ;;  %s1017_s1 = inlined_call_operand.hbm [shape: bf16[32,64], index: 1, kind: input, shape index: {}]   ;;  %s1018_s2 = inlined_call_operand.hbm [shape: bf16[32,64], index: 2, kind: input, shape index: {}]   ;;  %s1019_s3 = inlined_call_operand.hbm [shape: f32[1,64], index: 3, kind: input, shape index: {}]   ;;  %s1020_s4 = inlined_call_operand.hbm [shape: f32[1,64], index: 4, kind: input, shape index: {}]   ;;  %s1021_s5 = inlined_call_operand.vmem [shape: bf16[64,64], index: 5, kind: input, shape index: {}]   ;;  %s1022_s6 = inlined_call_operand.vmem [shape: bf16[64,64], index: 6, kind: input, shape index: {}]   ;;  %s1023_s7 = inlined_call_operand.hbm [shape: f32[1,64], index: 7, kind: input, shape index: {}]   ;;  %s1024_s8 = inlined_call_operand.hbm [shape: f32[1,64], index: 8, kind: input, shape index: {}]   ;;  %s1025_s9 = inlined_call_operand.vmem [shape: bf16[64,8], index: 9, kind: input, shape index: {}]   ;;  %s1026_s10 = inlined_call_operand.vmem [shape: bf16[64,8], index: 10, kind: input, shape index: {}]   ;;  %s1027_s11 = inlined_call_operand.vmem [shape: f32[1,8], index: 11, kind: input, shape index: {}]   ;;  %s1028_s12 = inlined_call_operand.vmem [shape: f32[1,8], index: 12, kind: input, shape index: {}]   ;;  %s1029_s13 = inlined_call_operand.vmem [shape: bf16[8,16], index: 13, kind: input, shape index: {}]   ;;  %s1030_s14 = inlined_call_operand.vmem [shape: f32[1,16], index: 14, kind: input, shape index: {}]   ;;  %s1031_s15 = inlined_call_operand.hbm [shape: f32[8,16], index: 15, kind: output, shape index: {}]  }
   0x1   :  { %21 = vsyncpa [#allocation6], 0 }
   0x2   :  { %22 = vsyncpa [#allocation9], 0 }
   0x3   :  { %23 = vsyncpa [#allocation12], 0 }
   0x4   :  { %24 = vsyncpa [#allocation4], 0  ;;  %s44_s20 = sshll.u32 %s1018_s2, 4  ;;  %s839_s21 = smov [#allocation5]   ;;  %s45_s20 = int_to_ptr.hbm [resolvable:$true] %s44_s20 }
   0x5   :  { %s46_s22 = sshll.u32 %s839_s21, 4  ;;  %s69_s25 = sshll.u32 %s1020_s4, 4  ;;  %s47_s22 = int_to_ptr.vmem [resolvable:$true] %s46_s22  ;;  %s70_s25 = int_to_ptr.hbm [resolvable:$true] %s69_s25 }
   0x6   :  { %s840_s26 = smov 64   ;;  %s841_s27 = smov 4  }
   0x7   :  { %52 = dma.hbm_to_vmem [thread:$0]  %s45_s20, 256, %s47_s22, [#allocation6], %s840_s26, %s840_s26, %s841_s27  }
   0x8   :  { %s842_s28 = smov [#allocation8]   ;;  %s31_s17 = sshll.u32 %s1017_s1, 4  ;;  %s32_s17 = int_to_ptr.hbm [resolvable:$true] %s31_s17 }
   0x9   :  { %s71_s29 = sshll.u32 %s842_s28, 4  ;;  %s58_s19 = sshll.u32 %s1019_s3, 4  ;;  %s72_s29 = int_to_ptr.vmem [resolvable:$true] %s71_s29  ;;  %s59_s19 = int_to_ptr.hbm [resolvable:$true] %s58_s19 }
   0xa   :  { %74 = dma.hbm_to_vmem [thread:$0]  %s70_s25, 16, %s72_s29, [#allocation9]  }
   0xb   :  { %s843_s21 = smov [#allocation2]   ;;  %s844_s4 = smov [#allocation7]  }
   0xc   :  { %s33_s23 = sshll.u32 %s843_s21, 4  ;;  %s60_s20 = sshll.u32 %s844_s4, 4  ;;  %s34_s23 = int_to_ptr.vmem [resolvable:$true] %s33_s23  ;;  %s61_s20 = int_to_ptr.vmem [resolvable:$true] %s60_s20 }
   0xd   :  { %39 = dma.hbm_to_vmem [thread:$0]  %s32_s17, 256, %s34_s23, [#allocation3], %s840_s26, %s840_s26, %s841_s27  }
   0xe   :  { %s84_s28 = sshll.u32 %s1023_s7, 4  ;;  %s95_s29 = sshll.u32 %s1024_s8, 4  ;;  %s85_s28 = int_to_ptr.hbm [resolvable:$true] %s84_s28  ;;  %s96_s29 = int_to_ptr.hbm [resolvable:$true] %s95_s29 }
   0xf   :  { %63 = dma.hbm_to_vmem [thread:$0]  %s59_s19, 16, %s61_s20, [#allocation6]  }
  0x10   :  { %s845_s30 = smov [#allocation10]   ;;  %s846_s16 = smov [#allocation11]  }
  0x11   :  { %s86_s3 = sshll.u32 %s845_s30, 4  ;;  %s97_s26 = sshll.u32 %s846_s16, 4  ;;  %s87_s3 = int_to_ptr.vmem [resolvable:$true] %s86_s3  ;;  %s98_s26 = int_to_ptr.vmem [resolvable:$true] %s97_s26 }
  0x12   :  { %89 = dma.hbm_to_vmem [thread:$0]  %s85_s28, 16, %s87_s3, [#allocation9]  }
  0x13   :  { %100 = dma.hbm_to_vmem [thread:$0]  %s96_s29, 16, %s98_s26, [#allocation12]  }
  0x14   :  { %829 = dma.done.wait [#allocation3], 256  }
  0x15   :  { %830 = vsyncadd [#allocation3], 4294967040 }
  0x16   :  { %831 = dma.done.wait [#allocation6], 272  }
  0x17   :  { %832 = vsyncadd [#allocation6], 4294967024 }
  0x18   :  { %833 = dma.done.wait [#allocation9], 32  }
  0x19   :  { %834 = vsyncadd [#allocation9], 4294967264 }
  0x1a   :  { %835 = dma.done.wait [#allocation12], 16  }
  0x1b   :  { %836 = vsyncadd [#allocation12], 4294967280  ;;  %v616_v0 = vld [vmem:[#allocation5 + $0x8] sm:$0xff]  ;;  %v615_v1 = vld [vmem:[#allocation5] sm:$0xff]  ;;  %vm159_vm0 = vcmask 261120   ;;  %vm266_vm5 = vcmask 523264  }
  0x1c   :  { %v614_v2 = vld [vmem:[#allocation2 + $0x8] sm:$0xff]  ;;  %202 = vmatpush.bf16.msra.mxu1 %v616_v0  ;;  %v613_v3 = vld [vmem:[#allocation2] sm:$0xff]  ;;  %v620_v5 = vld [vmem:[%s1021_s5 + $0x18] sm:$0xff]  ;;  %vm484_vm10 = vcmask 1043456   ;;  %vm480_vm15 = vcmask 64512   ;;  %s510_s29 = sshll.u32 %s1031_s15, 4  ;;  %s511_s29 = int_to_ptr.hbm [resolvable:$true] %s510_s29 }
  0x1d   :  { %169 = vmatpush.bf16.msra.mxu0 %v614_v2  ;;  %v138_v4 = vld [vmem:[%s1016_s0] sm:$0xf]  ;;  %v624_v6 = vld [vmem:[%s1022_s6 + $0x18] sm:$0xff]  ;;  %274 = vmatpush.bf16.msra.mxu2 %v620_v5  ;;  %v619_v7 = vld [vmem:[%s1021_s5 + $0x10] sm:$0xff] }
  0x1e   :  { %323 = vmatpush.bf16.msra.mxu3 %v624_v6  ;;  %v623_v8 = vld [vmem:[%s1022_s6 + $0x10] sm:$0xff]  ;;  %v618_v9 = vld [vmem:[%s1021_s5 + $0x8] sm:$0xff]  ;;  %v642_v11 = vld [vmem:[#allocation8] ss:$0 sm:$0xff] }
  0x1f   :  { %v622_v10 = vld [vmem:[%s1022_s6 + $0x8] sm:$0xff]  ;;  %v617_v12 = vld [vmem:[%s1021_s5] sm:$0xff]  ;;  %v632_v36 = vld [vmem:[%s1026_s10 + $0x18] sm:$0xff] }
  0x20   :  { %203 = vmatpush.bf16.msra.mxu1 %v615_v1  ;;  %v621_v13 = vld [vmem:[%s1022_s6] sm:$0xff]  ;;  %v628_v37 = vld [vmem:[%s1025_s9 + $0x18] sm:$0xff]  ;;  %v631_v38 = vld [vmem:[%s1026_s10 + $0x10] sm:$0xff] }
  0x21   :  { %170 = vmatpush.bf16.msra.mxu0 %v613_v3  ;;  %275 = vmatpush.bf16.msra.mxu2 %v619_v7  ;;  %v643_v24 = vld [vmem:[#allocation7] ss:$0 sm:$0xff]  ;;  %v627_v39 = vld [vmem:[%s1025_s9 + $0x10] sm:$0xff]  ;;  %v630_v40 = vld [vmem:[%s1026_s10 + $0x8] sm:$0xff] }
  0x22   :  { %324 = vmatpush.bf16.msra.mxu3 %v623_v8  ;;  %v626_v41 = vld [vmem:[%s1025_s9 + $0x8] sm:$0xff]  ;;  %v629_v42 = vld [vmem:[%s1026_s10] sm:$0xff] }
  0x23   :  { %540 = vmatmul.msk.bf16.vlgmr.msra.gmra.mxu1 %vm159_vm0, %v138_v4  ;;  %v625_v43 = vld [vmem:[%s1025_s9] sm:$0xff] }
  0x24   :  { %531 = vmatmul.msk.bf16.vlgmr.msra.gmra.mxu0 %vm159_vm0, %v138_v4  ;;  %445 = vmatpush.bf16.msrb.mxu1 %v632_v36  ;;  %v645_v44 = vld [vmem:[#allocation11] ss:$0 sm:$0xff]  ;;  %v644_v57 = vld [vmem:[#allocation10] ss:$0 sm:$0xff]  ;;  %v475_v3 = vld [vmem:[%s1029_s13] sm:$0xf] }
  0x25   :  { %276 = vmatpush.bf16.msra.mxu2 %v618_v9  ;;  %396 = vmatpush.bf16.msrb.mxu0 %v628_v37  ;;  %v486_v4 = vsel %vm484_vm10, %v475_v3, 0  ;;  %v647_v5 = vld [vmem:[%s1028_s12] ss:$0 sm:$0xff]  ;;  %vm501_vm0 = vcmask 130048  }
  0x26   :  { %325 = vmatpush.bf16.msra.mxu3 %v622_v10 }
  0x28   :  { %446 = vmatpush.bf16.msrb.mxu1 %v631_v38 }
  0x29   :  { %277 = vmatpush.bf16.msra.mxu2 %v617_v12  ;;  %397 = vmatpush.bf16.msrb.mxu0 %v627_v39 }
  0x2a   :  { %326 = vmatpush.bf16.msra.mxu3 %v621_v13 }
  0x2c   :  { %447 = vmatpush.bf16.msrb.mxu1 %v630_v40 }
  0x2d   :  { %398 = vmatpush.bf16.msrb.mxu0 %v626_v41  ;;  %495 = vmatpush.bf16.msrb.mxu2 %v486_v4 }
  0x30   :  { %448 = vmatpush.bf16.msrb.mxu1 %v629_v42 }
  0x31   :  { %399 = vmatpush.bf16.msrb.mxu0 %v625_v43 }
  0xa0   :  { %v205_v14 = vpop.f32.mrf.mxu1 }
  0xa1   :  { %v206_v15 = vadd.f32 %v642_v11, %v205_v14  ;;  %v172_v16 = vpop.f32.mrf.mxu0 }
  0xa2   :  { %v173_v29 = vadd.f32 %v643_v24, %v172_v16 }
  0xa3   :  { %v541_v17 = vmul.f32 -1.442695, %v206_v15 }
  0xa5   :  { %649 = vpow2.f32 %v541_v17 }
  0xa8   :  { %v207_v18 = vpop.f32.mrf.mxu1 }
  0xa9   :  { %v174_v19 = vpop.f32.mrf.mxu0  ;;  %v646_v18 = vld [vmem:[%s1027_s11] ss:$0 sm:$0xff]  ;;  %s847_s11 = smov [#allocation13]  }
  0xaa   :  { %s508_s28 = sshll.u32 %s847_s11, 4  ;;  %s509_s28 = int_to_ptr.vmem [resolvable:$true] %s508_s28 }
  0xab   :  { %v650_v20 = vpop.eup %649 }
  0xac   :  { %v212_v21 = vadd.f32 1.0, %v650_v20 }
  0xae   :  { %651 = vrcp.f32 %v212_v21  ;;  %v224_v26 = vand.u32 2147483648, %v212_v21  ;;  %v222_v28 = vand.u32 2147483647, %v212_v21  ;;  %vm218_vm2 = vweird.f32 %v212_v21 }
  0xb0   :  { %v225_v31 = vor.u32 1.1754944e-38, %v224_v26  ;;  %vm223_vm4 = vcmp.eq.f32.partialorder %v222_v28, 8.507059e+37  ;;  %v648_v28 = vld [vmem:[%s1030_s14] ss:$0 sm:$0xff] }
  0xb4   :  { %v652_v22 = vpop.eup %651 }
  0xb5   :  { %v214_v23 = vmul.f32 %v652_v22, %v212_v21  ;;  %vm219_vm1 = vweird.f32 %v652_v22 }
  0xb6   :  { %vm220_vm3 = vmor %vm218_vm2, %vm219_vm1 }
  0xb7   :  { %v215_v25 = vsub.f32 1.0, %v214_v23 }
  0xb9   :  { %v216_v27 = vmul.f32 %v652_v22, %v215_v25 }
  0xbb   :  { %v217_v30 = vadd.f32 %v652_v22, %v216_v27 }
  0xbd   :  { %v221_v32 = vsel %vm220_vm3, %v652_v22, %v217_v30 }
  0xbe   :  { %v226_v33 = vsel %vm223_vm4, %v225_v31, %v221_v32 }
  0xbf   :  { %v228_v34 = vmul.f32 %v226_v33, %v173_v29 }
  0xc1   :  { %v229_v35 = vpack.c.bf16 %v228_v34, %v228_v34 }
  0xc3   :  { %558 = vmatmul.msk.bf16.vlgmr.msra.gmra.mxu2 %vm266_vm5, %v229_v35  ;;  %575 = vmatmul.msk.bf16.vlgmr.msra.gmra.mxu3 %vm266_vm5, %v229_v35 }
 0x146   :  { %v279_v45 = vpop.f32.mrf.mxu2  ;;  %v328_v46 = vpop.f32.mrf.mxu3 }
 0x147   :  { %v329_v47 = vadd.f32 %v645_v44, %v328_v46  ;;  %v280_v62 = vadd.f32 %v644_v57, %v279_v45 }
 0x149   :  { %v576_v48 = vmul.f32 -1.442695, %v329_v47 }
 0x14b   :  { %653 = vpow2.f32 %v576_v48 }
 0x14e   :  { %v281_v49 = vpop.f32.mrf.mxu2  ;;  %v330_v50 = vpop.f32.mrf.mxu3 }
 0x151   :  { %v654_v51 = vpop.eup %653 }
 0x152   :  { %v335_v52 = vadd.f32 1.0, %v654_v51 }
 0x154   :  { %655 = vrcp.f32 %v335_v52  ;;  %v347_v56 = vand.u32 2147483648, %v335_v52  ;;  %v345_v59 = vand.u32 2147483647, %v335_v52  ;;  %vm341_vm7 = vweird.f32 %v335_v52 }
 0x156   :  { %v348_v61 = vor.u32 1.1754944e-38, %v347_v56  ;;  %vm346_vm9 = vcmp.eq.f32.partialorder %v345_v59, 8.507059e+37 }
 0x15a   :  { %v656_v53 = vpop.eup %655 }
 0x15b   :  { %v337_v54 = vmul.f32 %v656_v53, %v335_v52  ;;  %vm342_vm6 = vweird.f32 %v656_v53 }
 0x15c   :  { %vm343_vm8 = vmor %vm341_vm7, %vm342_vm6 }
 0x15d   :  { %v338_v55 = vsub.f32 1.0, %v337_v54 }
 0x15f   :  { %v339_v58 = vmul.f32 %v656_v53, %v338_v55 }
 0x161   :  { %v340_v60 = vadd.f32 %v656_v53, %v339_v58 }
 0x163   :  { %v344_v63 = vsel %vm343_vm8, %v656_v53, %v340_v60 }
 0x164   :  { %v349_v0 = vsel %vm346_vm9, %v348_v61, %v344_v63 }
 0x165   :  { %v351_v1 = vmul.f32 %v349_v0, %v280_v62 }
 0x167   :  { %v352_v2 = vpack.c.bf16 %v351_v1, %v351_v1 }
 0x169   :  { %593 = vmatmul.msk.bf16.vlgmr.msrb.gmra.mxu0 %vm266_vm5, %v352_v2  ;;  %610 = vmatmul.msk.bf16.vlgmr.msrb.gmra.mxu1 %vm266_vm5, %v352_v2 }
 0x1e6   :  { %v401_v6 = vpop.f32.mrf.mxu0  ;;  %v450_v7 = vpop.f32.mrf.mxu1 }
 0x1e7   :  { %v451_v8 = vadd.f32 %v647_v5, %v450_v7  ;;  %v402_v23 = vadd.f32 %v646_v18, %v401_v6 }
 0x1e9   :  { %v611_v9 = vmul.f32 -1.442695, %v451_v8 }
 0x1eb   :  { %657 = vpow2.f32 %v611_v9 }
 0x1ee   :  { %v403_v10 = vpop.f32.mrf.mxu0  ;;  %v452_v11 = vpop.f32.mrf.mxu1 }
 0x1f1   :  { %v658_v12 = vpop.eup %657 }
 0x1f2   :  { %v457_v13 = vadd.f32 1.0, %v658_v12 }
 0x1f4   :  { %659 = vrcp.f32 %v457_v13  ;;  %v469_v17 = vand.u32 2147483648, %v457_v13  ;;  %v467_v20 = vand.u32 2147483647, %v457_v13  ;;  %vm463_vm12 = vweird.f32 %v457_v13 }
 0x1f6   :  { %v470_v22 = vor.u32 1.1754944e-38, %v469_v17  ;;  %vm468_vm14 = vcmp.eq.f32.partialorder %v467_v20, 8.507059e+37 }
 0x1fa   :  { %v660_v14 = vpop.eup %659 }
 0x1fb   :  { %v459_v15 = vmul.f32 %v660_v14, %v457_v13  ;;  %vm464_vm11 = vweird.f32 %v660_v14 }
 0x1fc   :  { %vm465_vm13 = vmor %vm463_vm12, %vm464_vm11 }
 0x1fd   :  { %v460_v16 = vsub.f32 1.0, %v459_v15 }
 0x1ff   :  { %v461_v19 = vmul.f32 %v660_v14, %v460_v16 }
 0x201   :  { %v462_v21 = vadd.f32 %v660_v14, %v461_v19 }
 0x203   :  { %v466_v24 = vsel %vm465_vm13, %v660_v14, %v462_v21 }
 0x204   :  { %v471_v25 = vsel %vm468_vm14, %v470_v22, %v466_v24 }
 0x205   :  { %v473_v26 = vmul.f32 %v471_v25, %v402_v23 }
 0x207   :  { %v474_v27 = vpack.c.bf16 %v473_v26, %v473_v26 }
 0x209   :  { %612 = vmatmul.msk.bf16.vlgmr.msrb.gmra.mxu2 %vm480_vm15, %v474_v27 }
 0x28c   :  { %v497_v29 = vpop.f32.mrf.mxu2 }
 0x28d   :  { %v498_v30 = vadd.f32 %v648_v28, %v497_v29 }
 0x28f   :  { %502 = vst.msk [vmem:[#allocation13] sm:$0xff] %vm501_vm0, %v498_v30 }
 0x290   :  { %513 = dma.vmem_to_hbm [thread:$0]  %s509_s28, 128, %s511_s29, [#allocation4]  }
 0x294   :  { %v499_v31 = vpop.f32.mrf.mxu2 }
 0x295   :  { %837 = dma.done.wait [#allocation4], 128  }
 0x296   :  { %838 = vsyncadd [#allocation4], 4294967168 }
 0x297   :  { %518 = vsyncpa [#allocation3], 1 }
 0x298   :  { %519 = vsyncpa [#allocation6], 1 }
 0x299   :  { %520 = vsyncpa [#allocation9], 1 }
 0x29a   :  { %521 = vsyncpa [#allocation12], 1 }
 0x29b   :  { %522 = vsyncpa [#allocation4], 1 }

</bundles_post_ra>
